<compile_context>
chip_gen: v5e
topology: v5e:2x2
jax: 0.10.0
libtpu: 0.0.40
codegen_flags: <defaults>
</compile_context>

<pallas_src>
import jax
import jax.numpy as jnp
from jax.experimental import pallas as pl
from jax.experimental.pallas import tpu as pltpu

_LANE = 128
_MAX_BLOCK_ROWS = 512  # (512, 128) f32 tile = 256 KiB; safe on all generations


def _linear_kernel(w_ref, b_ref, x_ref, o_ref):
    # w_ref, b_ref: (1, 1) f32 scalars in SMEM (read once into locals).
    # x_ref / o_ref: (block_rows, 128) lane-dense tiles in VMEM.
    # nn.Linear(1, 1): y = x * w + b — pure VPU scale+shift, no MXU.
    w = w_ref[0, 0]
    b = b_ref[0, 0]
    o_ref[...] = (x_ref[...].astype(jnp.float32) * w + b).astype(o_ref.dtype)


def linear_regression_forward(x, weight, bias):
    """x: (N, 1), weight: (1, 1), bias: (1,) -> (N, 1). Same math as nn.Linear(1, 1)."""
    n = x.shape[0]
    out_dtype = x.dtype

    # Lane-dense view: flatten the (N, 1) column into a (rows, 128) slab, padding the
    # tail so the last tile is full. Padding is sliced off before returning.
    rows = pl.cdiv(n, _LANE)
    if rows <= _MAX_BLOCK_ROWS:
        block_rows = rows
        padded_rows = rows
    else:
        block_rows = _MAX_BLOCK_ROWS
        padded_rows = pl.cdiv(rows, block_rows) * block_rows

    padded = padded_rows * _LANE
    x_flat = x.reshape(-1)
    if padded != n:
        x_flat = jnp.pad(x_flat, (0, padded - n))
    x2d = x_flat.reshape(padded_rows, _LANE)

    w_smem = weight.reshape(1, 1).astype(jnp.float32)
    b_smem = bias.reshape(1, 1).astype(jnp.float32)

    out2d = pl.pallas_call(
        _linear_kernel,
        out_shape=jax.ShapeDtypeStruct((padded_rows, _LANE), out_dtype),
        grid_spec=pltpu.PrefetchScalarGridSpec(
            num_scalar_prefetch=0,
            grid=(padded_rows // block_rows,),
            in_specs=[
                pl.BlockSpec(memory_space=pltpu.MemorySpace.SMEM),   # weight scalar
                pl.BlockSpec(memory_space=pltpu.MemorySpace.SMEM),   # bias scalar
                pl.BlockSpec((block_rows, _LANE), lambda i: (i, 0)),  # x tile
            ],
            out_specs=pl.BlockSpec((block_rows, _LANE), lambda i: (i, 0)),
        ),
        compiler_params=pltpu.CompilerParams(
            dimension_semantics=("parallel",),  # use both TCs on v7x; no-op on v5e/v6e
        ),
    )(w_smem, b_smem, x2d)

    return out2d.reshape(-1)[:n].reshape(n, 1)


if __name__ == "__main__":
    key = jax.random.PRNGKey(0)
    k_x, k_w, k_b, k_x2 = jax.random.split(key, 4)

    # nn.Linear(1, 1) params: U(-1, 1) since fan_in = 1 (deterministic via PRNGKey).
    weight = jax.random.uniform(k_w, (1, 1), minval=-1.0, maxval=1.0, dtype=jnp.float32)
    bias = jax.random.uniform(k_b, (1,), minval=-1.0, maxval=1.0, dtype=jnp.float32)

    # Small batch of 8 scalar features (matches the module's expected (N, 1) input).
    x = jax.random.normal(k_x, (8, 1), dtype=jnp.float32)
    out = jax.block_until_ready(linear_regression_forward(x, weight, bias))
    ref = x @ weight.T + bias
    assert out.shape == (8, 1)
    assert jnp.allclose(out, ref, atol=1e-6), "mismatch vs reference (small)"

    # Larger batch to exercise the tiled, multi-step grid path (+ tail padding).
    x_big = jax.random.normal(k_x2, (70000, 1), dtype=jnp.float32)
    out_big = jax.block_until_ready(linear_regression_forward(x_big, weight, bias))
    ref_big = x_big @ weight.T + bias
    assert out_big.shape == (70000, 1)
    assert jnp.allclose(out_big, ref_big, atol=1e-6), "mismatch vs reference (large)"

    print("KERNEL_OK")
</pallas_src>

<mosaic_0001>
module attributes {stable_mosaic.version = 11 : i64} {
  func.func @_linear_kernel(%arg0: i32, %arg1: memref<1x1xf32, #tpu.memory_space<smem>>, %arg2: memref<1x1xf32, #tpu.memory_space<smem>>, %arg3: memref<1x128xf32, #tpu.memory_space<vmem>>, %arg4: memref<1x128xf32, #tpu.memory_space<vmem>>) attributes {dimension_semantics = [#tpu.dimension_semantics<parallel>], iteration_bounds = array<i64: 1>, scalar_prefetch = 0 : i64, scratch_operands = 0 : i64, tpu.core_type = #tpu.core_type<tc>, window_params = [{transform_indices = @transform_0, window_bounds = array<i64: 1, 1>}, {transform_indices = @transform_1, window_bounds = array<i64: 1, 1>}, {transform_indices = @transform_2, window_bounds = array<i64: 1, 128>}, {transform_indices = @transform_3, window_bounds = array<i64: 1, 128>}]} {
    %c0 = arith.constant 0 : index
    %c0_0 = arith.constant 0 : index
    %0 = memref.load %arg1[%c0, %c0_0] : memref<1x1xf32, #tpu.memory_space<smem>>
    %c0_1 = arith.constant 0 : index
    %c0_2 = arith.constant 0 : index
    %1 = memref.load %arg2[%c0_1, %c0_2] : memref<1x1xf32, #tpu.memory_space<smem>>
    %c0_3 = arith.constant 0 : index
    %c0_4 = arith.constant 0 : index
    %2 = vector.load %arg3[%c0_3, %c0_4] : memref<1x128xf32, #tpu.memory_space<vmem>>, vector<1x128xf32>
    %3 = vector.broadcast %0 : f32 to vector<1x128xf32>
    %4 = arith.mulf %2, %3 : vector<1x128xf32>
    %5 = vector.broadcast %1 : f32 to vector<1x128xf32>
    %6 = arith.addf %4, %5 : vector<1x128xf32>
    %c0_5 = arith.constant 0 : index
    %c0_6 = arith.constant 0 : index
    %7 = vector.load %arg4[%c0_5, %c0_6] : memref<1x128xf32, #tpu.memory_space<vmem>>, vector<1x128xf32>
    tpu.vector_store %arg4[%c0_5, %c0_6], %6 {strides = array<i32>} : memref<1x128xf32, #tpu.memory_space<vmem>>, vector<1x128xf32>,
    return
  }
  func.func @transform_0(%arg0: i32) -> (i32, i32) {
    %c0_i32 = arith.constant 0 : i32
    %c0_i32_0 = arith.constant 0 : i32
    %c0_i32_1 = arith.constant 0 : i32
    return %c0_i32, %c0_i32_0 : i32, i32
  }
  func.func @transform_1(%arg0: i32) -> (i32, i32) {
    %c0_i32 = arith.constant 0 : i32
    %c0_i32_0 = arith.constant 0 : i32
    %c0_i32_1 = arith.constant 0 : i32
    return %c0_i32, %c0_i32_0 : i32, i32
  }
  func.func @transform_2(%arg0: i32) -> (i32, i32) {
    %c0_i32 = arith.constant 0 : i32
    %c0_i32_0 = arith.constant 0 : i32
    return %arg0, %c0_i32 : i32, i32
  }
  func.func @transform_3(%arg0: i32) -> (i32, i32) {
    %c0_i32 = arith.constant 0 : i32
    %c0_i32_0 = arith.constant 0 : i32
    return %arg0, %c0_i32 : i32, i32
  }
}

</mosaic_0001>

<bundles_post_ra>
// kernel: tpu_custom_call.1
= control target key start
LH: loop header
LB: loop body
LE: loop exit
PB: predicated region body
PF: predicated region fallthrough
CT: control target
= control target key end

     0   :  { %s101_s0 = inlined_call_operand.<no memory space> [shape: f32[1,1], index: 0, kind: input, shape index: {}]   ;;  %s102_s1 = inlined_call_operand.<no memory space> [shape: f32[1,1], index: 1, kind: input, shape index: {}]   ;;  %s103_s2 = inlined_call_operand.vmem [shape: f32[1,128], index: 2, kind: input, shape index: {}]   ;;  %s104_s3 = inlined_call_operand.hbm [shape: f32[1,128], index: 3, kind: output, shape index: {}]  }
   0x1   :  { %v19_v0 = vld [vmem:[%s103_s2] sm:$0x1]  ;;  %v20_v1 = vstv %s101_s0  ;;  %v22_v2 = vstv %s102_s1 }
   0x2   :  { %10 = vsyncpa [#allocation5], 0  ;;  %s32_s20 = sshll.u32 %s104_s3, 4  ;;  %v21_v3 = vmul.f32 %v20_v1, %v19_v0  ;;  %s68_s21 = smov [#allocation4]   ;;  %s33_s20 = int_to_ptr.hbm [resolvable:$true] %s32_s20 }
   0x3   :  { %s30_s22 = sshll.u32 %s68_s21, 4  ;;  %s31_s22 = int_to_ptr.vmem [resolvable:$true] %s30_s22 }
   0x4   :  { %v23_v4 = vadd.f32 %v22_v2, %v21_v3 }
   0x6   :  { %24 = vst [vmem:[#allocation4] sm:$0x1] %v23_v4 }
   0x7   :  { %35 = dma.vmem_to_hbm [thread:$0]  %s31_s22, 16, %s33_s20, [#allocation5]  }
   0x8   :  { %66 = dma.done.wait [#allocation5], 16  }
   0x9   :  { %67 = vsyncadd [#allocation5], 4294967280 }
   0xa   :  { %40 = vsyncpa [#allocation5], 1 }

</bundles_post_ra>
